<compile_context>
chip_gen: v6e
topology: v6e:2x2x1
jax: 0.10.0
libtpu: 0.0.40
codegen_flags: <defaults>
</compile_context>

<pallas_src>
import math

import jax
import jax.numpy as jnp
from jax import lax
from jax.experimental import pallas as pl
from jax.experimental.pallas import tpu as pltpu


def _round_up(x, m):
    return ((x + m - 1) // m) * m


def _vmem_limit_bytes():
    """Scoped-VMEM budget per generation (half of physical, capped)."""
    try:
        cap = int(pltpu.get_tpu_info().vmem_capacity_bytes)
    except Exception:
        cap = 64 * 1024 * 1024  # conservative fallback (v7x per-TensorCore size)
    if cap <= 0:
        cap = 64 * 1024 * 1024
    # v5e/v6e (128 MiB) -> 64 MiB scoped; v7x (64 MiB per TC) -> 32 MiB scoped.
    return min(cap // 2, 96 * 1024 * 1024)


def _make_head_kernel(hw, thw):
    """Kernel closure: pooled-sum over HW tiles, then (TN, C) @ (C, Mp) + bias."""
    needs_mask = (hw % thw) != 0

    def kernel(x_ref, w_ref, b_ref, o_ref, acc_ref):
        # x_ref: (TN, C, thw) native dtype     w_ref: (C, Mp) f32, pre-scaled by 1/HW
        # b_ref: (1, Mp) f32                   o_ref: (1, TN, Mp) f32
        # acc_ref: (TN, C) f32 running spatial sum for the current batch tile.
        s = pl.program_id(1)

        @pl.when(s == 0)
        def _init():
            acc_ref[...] = jnp.zeros_like(acc_ref)

        x = x_ref[...].astype(jnp.float32)                   # cast in-kernel (bf16 stays bf16 in HBM)
        if needs_mask:
            # Tail tile of the HW axis: zero out the out-of-range lanes (exact,
            # because the 1/HW scale is folded into W).  Couple of VPU ops, free
            # under the DMA bottleneck.
            col = lax.broadcasted_iota(jnp.int32, x.shape, 2)
            x = jnp.where(s * thw + col < hw, x, 0.0)
        acc_ref[...] += jnp.sum(x, axis=2)                   # lane reduce (XLU) -> (TN, C)

        @pl.when(s == pl.num_programs(1) - 1)
        def _finalize():
            logits = jnp.dot(acc_ref[...], w_ref[...],
                             preferred_element_type=jnp.float32)   # (TN, Mp) on MXU
            o_ref[0] = (logits + b_ref[...]).astype(o_ref.dtype)   # lane-dense store

    return kernel


def prepare_level_params(weight, bias, hw, lane_pad=128):
    """Hoisted once per level: transpose W, fold 1/HW into it, pad classes to 128 lanes."""
    M, C = weight.shape
    Mp = _round_up(max(M, 1), lane_pad)
    # TODO(synk): for very large C on v7x, store W/b in bf16 to halve their VMEM footprint.
    w_scaled = weight.astype(jnp.float32).T / float(hw)               # (C, M)
    w_p = jnp.zeros((C, Mp), jnp.float32).at[:, :M].set(w_scaled)     # (C, Mp)
    b_p = jnp.zeros((1, Mp), jnp.float32).at[0, :M].set(bias.astype(jnp.float32))
    return w_p, b_p, M


def _choose_batch_tile(n):
    if n <= 1:
        return 1
    # At least 2 N-tiles so both v7x TensorCores get work; at most 8 rows per tile.
    return int(min(8, pl.cdiv(n, 2)))


def simple_head_level(x_nchw, w_p, b_p, n_classes, hw_tile_cap=None):
    """One head: x_nchw (N, C, H, W) native dtype, prepared params (C, Mp) / (1, Mp)."""
    N, C, H, W = x_nchw.shape
    HW = H * W
    Mp = w_p.shape[1]
    itemsize = x_nchw.dtype.itemsize

    # Free view -- NO transpose / pad, features stay untouched in HBM.
    x = x_nchw.reshape(N, C, HW)

    TN = _choose_batch_tile(N)
    n_nt = int(pl.cdiv(N, TN))

    vmem_limit = _vmem_limit_bytes()
    # Reserve the double-buffered weights/bias/output blocks and the accumulator,
    # hand the rest to the (double-buffered) feature blocks.
    reserve = (2 * _round_up(C, 8) * Mp * 4            # W, double-buffered
               + 2 * 8 * Mp * 4                        # bias
               + 2 * _round_up(TN, 8) * Mp * 4         # output blocks
               + _round_up(TN, 8) * _round_up(C, 128) * 4   # acc scratch
               + (1 << 20))                            # slack
    per_buf = max(1 << 20, (vmem_limit - reserve) // 2)

    # HW tile: as large as the budget allows; multiple of 128 lanes unless the
    # whole HW axis fits (full-extent blocks are always legal).
    thw_fit = max(1, per_buf // (TN * C * itemsize))
    if hw_tile_cap is not None:
        thw_fit = min(thw_fit, hw_tile_cap)
    if thw_fit >= HW:
        thw = HW
    else:
        thw = max(128, (thw_fit // 128) * 128)
        thw = min(thw, _round_up(HW, 128))
    n_s = int(pl.cdiv(HW, thw))

    out = pl.pallas_call(
        _make_head_kernel(HW, thw),
        out_shape=jax.ShapeDtypeStruct((n_nt, TN, Mp), jnp.float32),
        grid=(n_nt, n_s),
        in_specs=[
            pl.BlockSpec((TN, C, thw), lambda n, s: (n, 0, s)),
            pl.BlockSpec((C, Mp), lambda n, s: (0, 0)),   # constant -> VMEM-resident
            pl.BlockSpec((1, Mp), lambda n, s: (0, 0)),
        ],
        out_specs=pl.BlockSpec((1, TN, Mp), lambda n, s: (n, 0, 0)),
        scratch_shapes=[pltpu.VMEM((TN, C), jnp.float32)],
        compiler_params=pltpu.CompilerParams(
            dimension_semantics=("parallel", "arbitrary"),  # N-tiles parallel, HW reduction last
            vmem_limit_bytes=int(vmem_limit),
        ),
    )(x, w_p, b_p)

    # (n_nt, TN, Mp) -> (n_nt*TN, Mp) is a free reshape; slice off batch/class padding.
    return out.reshape(n_nt * TN, Mp)[:N, :n_classes]


def simple_head_forward(features, prepared_params, hw_tile_caps=None):
    """features: list of NCHW arrays; prepared_params: list of (w_p, b_p, n_classes)."""
    # TODO(synk): fuse all levels into one pallas_call (scalar-prefetched per-level
    # C/HW/weight offsets), or fuse the head into the backbone's last kernel, to
    # amortize launch overhead for tiny heads.
    if hw_tile_caps is None:
        hw_tile_caps = [None] * len(features)
    return [
        simple_head_level(feat, w_p, b_p, n_cls, hw_tile_cap=cap)
        for feat, (w_p, b_p, n_cls), cap in zip(features, prepared_params, hw_tile_caps)
    ]


def _init_linear_params(key, in_features, out_features):
    # Mimic nn.Linear default init: U(-1/sqrt(fan_in), 1/sqrt(fan_in)).
    k_w, k_b = jax.random.split(key)
    bound = 1.0 / math.sqrt(in_features)
    w = jax.random.uniform(k_w, (out_features, in_features),
                           minval=-bound, maxval=bound, dtype=jnp.float32)
    b = jax.random.uniform(k_b, (out_features,),
                           minval=-bound, maxval=bound, dtype=jnp.float32)
    return w, b


if __name__ == "__main__":
    key = jax.random.PRNGKey(0)

    N = 2
    n_classes = 3
    # Three feature levels: f32 single-tile, bf16 native-dtype path, and an
    # HW-tile-capped level that exercises the multi-tile reduction + tail mask.
    level_cfg = [
        ((N, 4, 16, 16), jnp.float32, None),
        ((N, 8, 8, 8), jnp.bfloat16, None),
        ((N, 8, 10, 20), jnp.float32, 128),
    ]

    keys = jax.random.split(key, 2 * len(level_cfg))
    features, raw_params, prepared, caps = [], [], [], []
    for i, (shp, dt, cap) in enumerate(level_cfg):
        feat = jax.random.normal(keys[2 * i], shp, dtype=dt)
        w, b = _init_linear_params(keys[2 * i + 1], shp[1], n_classes)
        features.append(feat)
        raw_params.append((w, b))
        prepared.append(prepare_level_params(w, b, shp[2] * shp[3]))
        caps.append(cap)

    logits = simple_head_forward(features, prepared, hw_tile_caps=caps)
    logits = [jax.block_until_ready(l) for l in logits]

    # Reference check in plain JAX (same math as the PyTorch forward, f32 accumulation).
    for feat, (w, b), out in zip(features, raw_params, logits):
        pooled = jnp.mean(feat.astype(jnp.float32), axis=(2, 3))   # (N, C)
        ref = pooled @ w.T + b                                     # (N, M)
        assert out.shape == (N, n_classes)
        assert jnp.allclose(out, ref, atol=1e-4, rtol=1e-4), (out, ref)

    print("KERNEL_OK")
</pallas_src>

<mosaic_0001>
module attributes {stable_mosaic.version = 11 : i64} {
  func.func @kernel(%arg0: i32, %arg1: i32, %arg2: memref<1x4x256xf32, #tpu.memory_space<vmem>>, %arg3: memref<4x128xf32, #tpu.memory_space<vmem>>, %arg4: memref<1x128xf32, #tpu.memory_space<vmem>>, %arg5: memref<1x1x128xf32, #tpu.memory_space<vmem>>, %arg6: memref<1x4xf32, #tpu.memory_space<vmem>>) attributes {dimension_semantics = [#tpu.dimension_semantics<parallel>, #tpu.dimension_semantics<arbitrary>], iteration_bounds = array<i64: 2, 1>, scalar_prefetch = 0 : i64, scratch_operands = 1 : i64, tpu.core_type = #tpu.core_type<tc>, window_params = [{transform_indices = @transform_0, window_bounds = array<i64: 1, 4, 256>}, {pipeline_mode = #tpu.pipeline_mode<synchronous>, transform_indices = @transform_1, window_bounds = array<i64: 4, 128>}, {pipeline_mode = #tpu.pipeline_mode<synchronous>, transform_indices = @transform_2, window_bounds = array<i64: 1, 128>}, {transform_indices = @transform_3, window_bounds = array<i64: 1, 1, 128>}]} {
    %c0_i32 = arith.constant 0 : i32
    %0 = arith.cmpi eq, %arg1, %c0_i32 : i32
    %1 = arith.extui %0 : i1 to i32
    %c0_i32_0 = arith.constant 0 : i32
    %2 = arith.cmpi ne, %1, %c0_i32_0 : i32
    scf.if %2 {
      %cst_9 = arith.constant 0.000000e+00 : f32
      %11 = vector.broadcast %cst_9 : f32 to vector<1x4xf32>
      %c0_10 = arith.constant 0 : index
      %c0_11 = arith.constant 0 : index
      %12 = vector.load %arg6[%c0_10, %c0_11] : memref<1x4xf32, #tpu.memory_space<vmem>>, vector<1x4xf32>
      tpu.vector_store %arg6[%c0_10, %c0_11], %11 {strides = array<i32>} : memref<1x4xf32, #tpu.memory_space<vmem>>, vector<1x4xf32>,
    } else {
    }
    %c0 = arith.constant 0 : index
    %c0_1 = arith.constant 0 : index
    %c0_2 = arith.constant 0 : index
    %3 = vector.load %arg2[%c0, %c0_1, %c0_2] : memref<1x4x256xf32, #tpu.memory_space<vmem>>, vector<1x4x256xf32>
    %c0_3 = arith.constant 0 : index
    %c0_4 = arith.constant 0 : index
    %4 = vector.load %arg6[%c0_3, %c0_4] : memref<1x4xf32, #tpu.memory_space<vmem>>, vector<1x4xf32>
    %cst = arith.constant dense<0.000000e+00> : vector<1x4xf32>
    %5 = vector.multi_reduction <add>, %3, %cst [2] : vector<1x4x256xf32> to vector<1x4xf32>
    %6 = arith.addf %4, %5 : vector<1x4xf32>
    %c0_5 = arith.constant 0 : index
    %c0_6 = arith.constant 0 : index
    %7 = vector.load %arg6[%c0_5, %c0_6] : memref<1x4xf32, #tpu.memory_space<vmem>>, vector<1x4xf32>
    tpu.vector_store %arg6[%c0_5, %c0_6], %6 {strides = array<i32>} : memref<1x4xf32, #tpu.memory_space<vmem>>, vector<1x4xf32>,
    %c0_i32_7 = arith.constant 0 : i32
    %8 = arith.cmpi eq, %arg1, %c0_i32_7 : i32
    %9 = arith.extui %8 : i1 to i32
    %c0_i32_8 = arith.constant 0 : i32
    %10 = arith.cmpi ne, %9, %c0_i32_8 : i32
    scf.if %10 {
      %c0_9 = arith.constant 0 : index
      %c0_10 = arith.constant 0 : index
      %11 = vector.load %arg6[%c0_9, %c0_10] : memref<1x4xf32, #tpu.memory_space<vmem>>, vector<1x4xf32>
      %c0_11 = arith.constant 0 : index
      %c0_12 = arith.constant 0 : index
      %12 = vector.load %arg3[%c0_11, %c0_12] : memref<4x128xf32, #tpu.memory_space<vmem>>, vector<4x128xf32>
      %cst_13 = arith.constant dense<0.000000e+00> : vector<1x128xf32>
      %13 = tpu.matmul %11, %12, %cst_13 {dimension_numbers = #tpu.dot_dimension_numbers<[1], [0], [0], [1], [0, 0, 1, 1], [], []>} : vector<1x4xf32>, vector<4x128xf32>, vector<1x128xf32> -> vector<1x128xf32>
      %c0_14 = arith.constant 0 : index
      %c0_15 = arith.constant 0 : index
      %14 = vector.load %arg4[%c0_14, %c0_15] : memref<1x128xf32, #tpu.memory_space<vmem>>, vector<1x128xf32>
      %15 = arith.addf %13, %14 : vector<1x128xf32>
      %c0_16 = arith.constant 0 : index
      %c0_17 = arith.constant 0 : index
      %c0_18 = arith.constant 0 : index
      %16 = vector.load %arg5[%c0_16, %c0_17, %c0_18] : memref<1x1x128xf32, #tpu.memory_space<vmem>>, vector<1x1x128xf32>
      %17 = vector.shape_cast %16 : vector<1x1x128xf32> to vector<1x128xf32>
      %18 = vector.shape_cast %15 : vector<1x128xf32> to vector<1x1x128xf32>
      tpu.vector_store %arg5[%c0_16, %c0_17, %c0_18], %18 {strides = array<i32>} : memref<1x1x128xf32, #tpu.memory_space<vmem>>, vector<1x1x128xf32>,
    } else {
    }
    return
  }
  func.func @transform_0(%arg0: i32, %arg1: i32) -> (i32, i32, i32) {
    %c0_i32 = arith.constant 0 : i32
    %c0_i32_0 = arith.constant 0 : i32
    return %arg0, %c0_i32, %arg1 : i32, i32, i32
  }
  func.func @transform_1(%arg0: i32, %arg1: i32) -> (i32, i32) {
    %c0_i32 = arith.constant 0 : i32
    %c0_i32_0 = arith.constant 0 : i32
    %c0_i32_1 = arith.constant 0 : i32
    return %c0_i32, %c0_i32_0 : i32, i32
  }
  func.func @transform_2(%arg0: i32, %arg1: i32) -> (i32, i32) {
    %c0_i32 = arith.constant 0 : i32
    %c0_i32_0 = arith.constant 0 : i32
    %c0_i32_1 = arith.constant 0 : i32
    return %c0_i32, %c0_i32_0 : i32, i32
  }
  func.func @transform_3(%arg0: i32, %arg1: i32) -> (i32, i32, i32) {
    %c0_i32 = arith.constant 0 : i32
    %c0_i32_0 = arith.constant 0 : i32
    %c0_i32_1 = arith.constant 0 : i32
    return %arg0, %c0_i32, %c0_i32_0 : i32, i32, i32
  }
}

</mosaic_0001>

<bundles_post_ra>
// kernel: tpu_custom_call.1
= control target key start
LH: loop header
LB: loop body
LE: loop exit
PB: predicated region body
PF: predicated region fallthrough
CT: control target
= control target key end

     0   :  { %8 = vsyncpa [#allocation4], 0  ;;  %s931_s0 = inlined_call_operand.hbm [shape: f32[2,4,256], index: 0, kind: input, shape index: {}]   ;;  %s932_s1 = inlined_call_operand.hbm [shape: f32[4,128], index: 1, kind: input, shape index: {}]   ;;  %s933_s2 = inlined_call_operand.vmem [shape: f32[1,128], index: 2, kind: input, shape index: {}]   ;;  %s934_s3 = inlined_call_operand.hbm [shape: f32[2,1,128], index: 3, kind: output, shape index: {}]  }
   0x1   :  { %10 = vsyncpa [#allocation4 + $0x1], 0 }
   0x2   :  { %11 = vsyncpa [#allocation7], 0 }
   0x3   :  { %12 = vsyncpa [#allocation5], 0 }
   0x4   :  { %14 = vsyncpa [#allocation5 + $0x1], 0  ;;  %s755_s12 = smov 0   ;;  %s757_s13 = smov 0  }
   0x5   :  { %s759_s14 = smov 0   ;;  %s761_s15 = smov 0  }
   0x6   :  { %s763_s16 = smov 0   ;;  %s765_s17 = smov 0  }
   0x7 LB: > { %s485_s18 = sadd.s32 4294967295, %s726_s17   ;;  %s486_s19 = sadd.s32 4294967294, %s726_s17   ;;  %s726_s17 = sphi %s765_s17, %s20_s17   ;;  %s722_s16 = sphi %s763_s16, %s951_s16   ;;  %s718_s15 = sphi %s761_s15, %s950_s15   ;;  %s714_s14 = sphi %s759_s14, %s949_s14   ;;  %s710_s13 = sphi %s757_s13, %s948_s13   ;;  %s706_s12 = sphi %s755_s12, %s947_s12  }
   0x8   : > { %p54_p0 = scmp.ne.s32.totalorder %s710_s13, %s706_s12  ;;  %p789_p1 = scmp.eq.s32.totalorder %s485_s18, 0 }
   0x9   : > { %p793_p2 = scmp.eq.s32.totalorder %s485_s18, 1  ;;  %p126_p3 = scmp.eq.s32.totalorder %s486_s19, 1 }
   0xa   : > { %p799_p4 = por %p789_p1, %p54_p0  ;;  %p487_p5 = scmp.ge.s32.totalorder %s726_s17, 1 }
   0xb   : > { %p804_p6 = por %p126_p3, %p54_p0  ;;  %p133_p7 = scmp.lt.s32.totalorder %s726_s17, 3 }
   0xc   : > { %s938_s22 = scalar_select %p799_p4, 1, 0 }
   0xd   : > { %s939_s23 = scalar_select %p804_p6, 1, 0 }
   0xe   : > { %p809_p8 = pnand %p487_p5, %p133_p7  ;;  %s728_s25 = smov [#allocation6]  }
   0xf   : > { %s146_s26 = sshll.u32 %s728_s25, 4  ;;  %s32_s28 = sadd.s32 1, %s722_s16  ;;  %s147_s26 = int_to_ptr.vmem [resolvable:$true] %s146_s26 }
  0x10   : > { %p517_p10 = pneg %p809_p8  ;;  %s41_s29 = sadd.s32 1, %s714_s14 }
  0x11   : > { %p34_p12 = scmp.ge.s32.totalorder %s32_s28, 2  ;;  %s599_s30 = scalar_lea.vmem %s147_s26, 64 }
  0x12   : > { %p818_p11 = pnand %p517_p10, %p789_p1  ;;  %p600_p0 = scmp.ne.s32.totalorder %s147_s26, %s599_s30 }
  0x13   : > { %p607_p7 = scmp.lt.s32.totalorder %s147_s26, %s147_s26  ;;  %p608_p6 = scmp.lt.s32.totalorder %s599_s30, %s599_s30 }
  0x14   : > { %p590_p13 = pneg %p818_p11 }
  0x15   : > { %p609_p9 = por %p608_p6, %p607_p7 }
  0x16   : > { %p602_p3 = pnand %p600_p0, %p590_p13 }
  0x18   : > { %p603_p5 = pneg %p602_p3 }
  0x1a   : > { %p610_p4 = pnand %p609_p9, %p603_p5 }
  0x1c   : > { %613 = shalt.err (!%p610_p4)
}
  0x1d   : > { %520 = dma.hbm_to_vmem [thread:$0]  (!%p818_p11), %s932_s1, 64, %s147_s26, [#allocation7]  }
  0x1e   : > { %s953_s28 = smov (%p34_p12, %s32_s28), 0  ;;  %p48_p6 = scmp.ne.s32.totalorder %s714_s14, %s710_s13 }
  0x1f   : > { %p49_p4 = scmp.eq.s32.totalorder %s726_s17, 0  ;;  %s36_s6 = ssub.s32 %s722_s16, %s953_s28 }
  0x20   : > { %p530_p9 = scmp.lt.s32.totalorder %s726_s17, 2  ;;  %p39_p10 = scmp.eq.s32.totalorder %s36_s6, 0 }
  0x21   : > { %p50_p13 = por %p49_p4, %p48_p6  ;;  %p841_p0 = por %p793_p2, %p48_p6 }
  0x22   : > { %s160_s8 = sand.u32 1, %s714_s14   ;;  %s501_s11 = sshll.u32 %s722_s16, 7 }
  0x23   : > { %s847_s9 = scalar_select %p39_p10, %s714_s14, %s41_s29  }
  0x24   : > { %s490_s10 = sshll.u32 %s160_s8, 3  ;;  %s172_s25 = scalar_lea.hbm %s931_s0, %s501_s11 }
  0x25   : > { %s164_s26 = scalar_lea.vmem [#allocation3], %s490_s10  ;;  %p853_p11 = pnand %p530_p9, %p50_p13 }
  0x26   : > { %s174_s27 = sshll.u32 %s164_s26, 4  ;;  %s161_s21 = scalar_lea.sflag [#allocation4], %s160_s8  ;;  %s175_s27 = int_to_ptr.vmem [resolvable:$true] %s174_s27 }
  0x27   : > { %p616_p2 = pneg %p853_p11  ;;  %s627_s4 = scalar_lea.vmem %s175_s27, 128 }
  0x28   : > { %p628_p12 = scmp.ne.s32.totalorder %s175_s27, %s627_s4  ;;  %s729_s29 = smov [#allocation3]  }
  0x29   : > { %s632_s5 = sshll.u32 %s729_s29, 4  ;;  %s633_s5 = int_to_ptr.vmem [resolvable:$false] %s632_s5 }
  0x2a   : > { %p630_p3 = pnand %p628_p12, %p616_p2  ;;  %s634_s6 = scalar_lea.vmem %s633_s5, 256 }
  0x2b   : > { %p635_p7 = scmp.lt.s32.totalorder %s175_s27, %s633_s5  ;;  %p636_p6 = scmp.lt.s32.totalorder %s634_s6, %s627_s4 }
  0x2c   : > { %p631_p5 = pneg %p630_p3 }
  0x2d   : > { %p637_p4 = por %p636_p6, %p635_p7 }
  0x2f   : > { %p638_p10 = pnand %p637_p4, %p631_p5 }
  0x31   : > { %641 = shalt.err (!%p638_p10)
}
  0x32   : > { %524 = dma.hbm_to_vmem [thread:$0]  (!%p853_p11), %s172_s25, 128, %s175_s27, %s161_s21  }
  0x33   : > { %183 = sbr.rel (%p809_p8) target bundleno = 561 (0x231), region = 32  ;;  %s864_s8 = sand.u32 (!%p809_p8), 1, %s710_s13  }
  0x34   : > { %s494_s10 = sshll.u32 (!%p809_p8), %s864_s8, 3  ;;  %s186_s11 = scalar_lea.sflag (!%p809_p8), [#allocation4], %s864_s8 }
  0x35   : > { %s189_s18 = scalar_lea.vmem (!%p809_p8), [#allocation3], %s494_s10  ;;  %p944_p9 = scmp.ne.s32.totalorder (!%p809_p8), %s938_s22, 0 }
  0x38   : > { %693 = dma.done.wait (%p944_p9), %s186_s11, 128  }
  0x39   : > { %695 = vsyncadd (%p944_p9), %s186_s11, 4294967168 }
  0x3a   : > { %697 = dma.done.wait (%p789_p1), [#allocation7], 64  }
  0x3b   : > { %699 = vsyncadd (%p789_p1), [#allocation7], 4294967232  ;;  %vm227_vm0 = vcmask 1043456   ;;  %v222_v0 = vld [vmem:[%s189_s18] sm:$0xff]  ;;  %v730_v5 = vmov 0   ;;  %v234_v6 = vlaneseq  ;;  %vm220_vm1 = vcmask 24576  }
  0x3c   : > { %v225_v1 = vcombine.high %v222_v0, %v222_v0  ;;  %v228_v2 = vsel %vm227_vm0, %v222_v0, 0.0  ;;  %586 = vset.pattern.permute.xlu0 %v730_v5  ;;  %v731_v10 = vmov 1966171168   ;;  %v732_v27 = vmov 0.0   ;;  %v305_v30 = vld [vmem:[#allocation6] sm:$0xf] }
  0x3d   : > { %v235_v7 = vshrl.u32 %v234_v6, 7  ;;  %v278_v8 = vand.u32 127, %v234_v6  ;;  %v253_v11 = vunpack.c.l.s4 %v731_v10  ;;  %221 = vst.msk [vmem:[#allocation2] sm:$0x1] %vm220_vm1, %v732_v27  ;;  %504 = vmatprep.subr.mxu0 %v732_v27  ;;  %vm733_vm2 = vmmov 0   ;;  %s498_s24 = sshll.u32 %s718_s15, 4 }
  0x3e   : > { %v229_v3 = vsel %vm227_vm0, %v225_v1, 0.0  ;;  %505 = vmatpush3.msk.msra.mxu0 %vm227_vm0, %v305_v30  ;;  %506 = vmatprep.mubr.msk.f32.mxu0 %vm733_vm2, %v732_v27  ;;  %vm307_vm3 = vcmask 31744   ;;  %v306_v38 = vld [vmem:[%s933_s2] sm:$0x1]  ;;  %s214_s19 = scalar_lea.vmem [#allocation8], %s864_s8  ;;  %s889_s30 = scalar_lea.hbm %s934_s3, %s498_s24 }
  0x3f   : > { %v230_v4 = vadd.f32 %v229_v3, %v228_v2  ;;  %v281_v9 = vsub.s32 %v278_v8, %v235_v7  ;;  %v254_v12 = vunpack.c.0.s8 %v253_v11  ;;  %v236_v13 = vsub.s32 0, %v235_v7  ;;  %s398_s25 = sshll.u32 %s214_s19, 4  ;;  %s386_s21 = scalar_lea.sflag [#allocation5], %s864_s8  ;;  %s399_s25 = int_to_ptr.vmem [resolvable:$true] %s398_s25 }
  0x40   : > { %v240_v14 = vsub.s32 1, %v235_v7  ;;  %v244_v15 = vsub.s32 2, %v235_v7  ;;  %v248_v16 = vsub.s32 3, %v235_v7  ;;  %s642_s4 = scalar_lea.vmem %s399_s25, 16  ;;  %s734_s29 = smov [#allocation8]  }
  0x41   : > { %231 = vadd.xlane.f32.xlu0 %v230_v4  ;;  %v257_v18 = vsub.s32 %v254_v12, %v235_v7  ;;  %p643_p1 = scmp.ne.s32.totalorder %s399_s25, %s642_s4  ;;  %s646_s15 = sshll.u32 %s734_s29, 4  ;;  %s647_s15 = int_to_ptr.vmem [resolvable:$false] %s646_s15 }
  0x42   : > { %s648_s5 = scalar_lea.vmem %s647_s15, 32  ;;  %p649_p11 = scmp.lt.s32.totalorder %s399_s25, %s647_s15 }
  0x43   : > { %p644_p8 = pnand %p643_p1, %p841_p0  ;;  %p650_p2 = scmp.lt.s32.totalorder %s648_s5, %s642_s4 }
  0x44   : > { %v223_v34 = vld [vmem:[#allocation2] sm:$0x1] }
  0x45   : > { %p645_p13 = pneg %p644_p8  ;;  %p651_p12 = por %p650_p2, %p649_p11 }
  0x47   : > { %p652_p3 = pnand %p651_p12, %p645_p13 }
  0xca   : > { %v232_v17 = vpop.xlane.xlu0 %231 }
  0xcb   : > { %v237_v19 = vrot.slane %v232_v17, %v236_v13  ;;  %v241_v20 = vrot.slane %v232_v17, %v240_v14  ;;  %v245_v21 = vrot.slane %v232_v17, %v244_v15  ;;  %v249_v22 = vrot.slane %v232_v17, %v248_v16 }
  0xcd   : > { %v250_v23 = vcombine.low %v237_v19, %v241_v20  ;;  %v251_v24 = vcombine.low %v245_v21, %v249_v22 }
  0xcf   : > { %v258_v25 = vrot.slane %v250_v23, %v257_v18  ;;  %v265_v26 = vrot.slane %v251_v24, %v257_v18 }
  0xd1   : > { %v266_v28 = vcombine.low %v258_v25, %v265_v26 }
  0xd3   : > { %v273_v29 = vrot.slane %v266_v28, %v257_v18 }
  0xd5   : > { %275 = vperm.xlu0 %586, %v273_v29  }
 0x150   : > { %v276_v31 = vpop.permute.xlu0 %275 }
 0x151   : > { %v282_v32 = vrot.slane %v276_v31, %v281_v9 }
 0x153   : > { %v289_v33 = vrot.slane %v282_v32, %v257_v18 }
 0x155   : > { %v296_v35 = vrot.slane %v289_v33, %v257_v18 }
 0x157   : > { %v298_v36 = vadd.f32 %v296_v35, %v223_v34 }
 0x159   : > { %300 = vst.msk [vmem:[#allocation2] sm:$0x1] %vm220_vm1, %v298_v36 }
 0x160   : > { %v304_v37 = vld [vmem:[#allocation2] sm:$0x1] }
 0x161   : > { %507 = vmatmul.mubr.msk.f32.vlgmr.msra.gmra.mxu0 %vm307_vm3, %v304_v37 }
 0x221   : > { %v380_v39 = vpop.f32.mrf.mxu0 }
 0x222   : > { %v381_v40 = vadd.f32 %v380_v39, %v306_v38 }
 0x223   : > { %v508_v41 = vpop.f32.mrf.mxu0 }
 0x224   : > { %384 = vst [vmem:[%s214_s19] sm:$0x1] %v381_v40 }
 0x225   : > { %655 = shalt.err (!%p652_p3)
}
 0x226   : > { %s656_s6 = scalar_lea.hbm %s889_s30, 16  ;;  %s660_s11 = scalar_lea.hbm %s934_s3, 32 }
 0x227   : > { %p657_p5 = scmp.ne.s32.totalorder %s889_s30, %s656_s6  ;;  %p661_p4 = scmp.lt.s32.totalorder %s889_s30, %s934_s3 }
 0x228   : > { %p662_p10 = scmp.lt.s32.totalorder %s660_s11, %s656_s6 }
 0x229   : > { %p658_p7 = pnand %p657_p5, %p841_p0 }
 0x22a   : > { %p663_p9 = por %p662_p10, %p661_p4 }
 0x22b   : > { %p659_p6 = pneg %p658_p7 }
 0x22d   : > { %p664_p1 = pnand %p663_p9, %p659_p6 }
 0x22f   : > { %667 = shalt.err (!%p664_p1)
}
 0x230   : > { %515 = dma.vmem_to_hbm [thread:$0]  (%p841_p0), %s399_s25, 16, %s889_s30, %s386_s21  }
 0x231 PF: > { %s410_s22 = sand.u32 1, %s706_s12   ;;  %p945_p8 = scmp.ne.s32.totalorder %s939_s23, 0 }
 0x232   : > { %p946_p13 = scmp.ge.s32.totalorder %s726_s17, 2  ;;  %s411_s24 = scalar_lea.sflag [#allocation5], %s410_s22 }
 0x234   : > { %p526_p11 = pnand %p946_p13, %p945_p8 }
 0x236   : > { %p527_p2 = pneg %p526_p11 }
 0x238   : > { %701 = dma.done.wait (%p527_p2), %s411_s24, 16  }
 0x239   : > { %703 = vsyncadd (%p527_p2), %s411_s24, 4294967280  ;;  %s20_s17 = sadd.s32 1, %s726_s17   ;;  %s947_s12 = smov %s710_s13 }
 0x23a   : > { %p17_p12 = scmp.ge.s32.totalorder %s20_s17, 4   ;;  %s948_s13 = smov %s714_s14 }
 0x23b   : > { %s949_s14 = smov %s847_s9  ;;  %s950_s15 = smov %s722_s16 }
 0x23c   : > { %s951_s16 = smov %s953_s28  ;;  %19 = sbr.rel (!%p17_p12) target bundleno = 7 (0x7), region = 89 }
 0x241   :  { %415 = vsyncpa [#allocation4], 1 }
 0x242   :  { %417 = vsyncpa [#allocation4 + $0x1], 1 }
 0x243   :  { %418 = vsyncpa [#allocation7], 1 }
 0x244   :  { %419 = vsyncpa [#allocation5], 1 }
 0x245   :  { %421 = vsyncpa [#allocation5 + $0x1], 1 }

</bundles_post_ra>
